<compile_context>
chip_gen: v7x
topology: tpu7x:2x2x1
jax: 0.10.0
libtpu: 0.0.40
codegen_flags: <defaults>
</compile_context>

<pallas_src>
import jax
import jax.numpy as jnp
from jax.experimental import pallas as pl
from jax.experimental.pallas import tpu as pltpu

EPS = 1e-5
LANE = 128


# ----------------------------------------------------------------------------
# Single-pass kernel: grid over H only, full N rows resident per block.
# ----------------------------------------------------------------------------
def _make_single_pass_kernel(use_mxu_sum):
    def kernel(x_ref, gamma_ref, beta_ref, o_ref):
        x = x_ref[...]                                  # (N, tile_h), native dtype
        n = x.shape[0]
        inv_n = jnp.float32(1.0 / n)

        if use_mxu_sum:
            # bf16/f16: row-sum on the (otherwise idle) MXU with exact f32
            # accumulation; also removes the explicit cast for the sum.
            ones = jnp.ones((8, n), dtype=x.dtype)
            mean = jnp.dot(ones, x, preferred_element_type=jnp.float32)[0:1] * inv_n
        else:
            mean = jnp.sum(x.astype(jnp.float32), axis=0, keepdims=True) * inv_n

        # Centered variance over the VMEM-resident tile (no extra HBM traffic);
        # avoids E[x^2]-mean^2 catastrophic cancellation.
        centered = x.astype(jnp.float32) - mean          # (N, tile_h) f32
        var = jnp.sum(centered * centered, axis=0, keepdims=True) * inv_n
        inv_std = jax.lax.rsqrt(var + EPS)               # EUP rsqrt

        # Fused per-feature affine: 1 mul + 1 add per element in the store phase.
        scale = inv_std * gamma_ref[...]                 # (1, tile_h) f32
        shift = beta_ref[...] - mean * scale             # (1, tile_h) f32
        o_ref[...] = (x * scale + shift).astype(o_ref.dtype)

    return kernel


def _seqbn_single_pass(x2d, gamma2d, beta2d, tile_h, vmem_limit):
    n, hidden = x2d.shape
    grid_h = pl.cdiv(hidden, tile_h)
    use_mxu_sum = jnp.dtype(x2d.dtype).itemsize <= 2

    return pl.pallas_call(
        _make_single_pass_kernel(use_mxu_sum),
        out_shape=jax.ShapeDtypeStruct((n, hidden), x2d.dtype),
        grid_spec=pltpu.PrefetchScalarGridSpec(
            num_scalar_prefetch=0,
            grid=(grid_h,),
            in_specs=[
                pl.BlockSpec((n, tile_h), lambda j: (0, j)),
                pl.BlockSpec((1, tile_h), lambda j: (0, j)),
                pl.BlockSpec((1, tile_h), lambda j: (0, j)),
            ],
            out_specs=pl.BlockSpec((n, tile_h), lambda j: (0, j)),
        ),
        compiler_params=pltpu.CompilerParams(
            dimension_semantics=("parallel",),
            vmem_limit_bytes=vmem_limit,
        ),
    )(x2d, gamma2d, beta2d)


# ----------------------------------------------------------------------------
# Two-pass fallback for tall N: pass 1 = streaming sum/sumsq, pass 2 = affine.
# ----------------------------------------------------------------------------
def _seqbn_two_pass(x2d, gamma2d, beta2d, tile_h, tile_n, vmem_limit):
    n, hidden = x2d.shape
    gh = pl.cdiv(hidden, tile_h)
    gn = pl.cdiv(n, tile_n)
    mask_rows = (n % tile_n) != 0

    # Streaming sums: E[x^2]-mean^2 here is unavoidable for a one-shot streaming
    # reduction; both sums are accumulated in f32.
    def stats_kernel(x_ref, sum_ref, sq_ref):
        ni = pl.program_id(1)

        @pl.when(ni == 0)
        def _():
            sum_ref[...] = jnp.zeros_like(sum_ref)
            sq_ref[...] = jnp.zeros_like(sq_ref)

        xf = x_ref[...].astype(jnp.float32)
        if mask_rows:  # zero out rows past N in the partial last N-tile
            rows = jax.lax.broadcasted_iota(jnp.int32, xf.shape, 0)
            xf = jnp.where(ni * tile_n + rows < n, xf, 0.0)
        sum_ref[...] += jnp.sum(xf, axis=0, keepdims=True)
        sq_ref[...] += jnp.sum(xf * xf, axis=0, keepdims=True)

    s, sq = pl.pallas_call(
        stats_kernel,
        out_shape=(jax.ShapeDtypeStruct((1, hidden), jnp.float32),
                   jax.ShapeDtypeStruct((1, hidden), jnp.float32)),
        grid_spec=pltpu.PrefetchScalarGridSpec(
            num_scalar_prefetch=0,
            grid=(gh, gn),
            in_specs=[pl.BlockSpec((tile_n, tile_h), lambda j, i: (i, j))],
            out_specs=[pl.BlockSpec((1, tile_h), lambda j, i: (0, j)),
                       pl.BlockSpec((1, tile_h), lambda j, i: (0, j))],
        ),
        compiler_params=pltpu.CompilerParams(
            dimension_semantics=("parallel", "arbitrary"),
            vmem_limit_bytes=vmem_limit,
        ),
    )(x2d)

    # Tiny (1, H) math between the passes.
    inv_n = jnp.float32(1.0 / n)
    mean = s * inv_n
    var = jnp.maximum(sq * inv_n - mean * mean, 0.0)
    inv_std = jax.lax.rsqrt(var + EPS)
    scale = inv_std * gamma2d
    shift = beta2d - mean * scale

    def apply_kernel(x_ref, scale_ref, shift_ref, o_ref):
        o_ref[...] = (x_ref[...] * scale_ref[...] + shift_ref[...]).astype(o_ref.dtype)

    return pl.pallas_call(
        apply_kernel,
        out_shape=jax.ShapeDtypeStruct((n, hidden), x2d.dtype),
        grid_spec=pltpu.PrefetchScalarGridSpec(
            num_scalar_prefetch=0,
            grid=(gh, gn),
            in_specs=[
                pl.BlockSpec((tile_n, tile_h), lambda j, i: (i, j)),
                pl.BlockSpec((1, tile_h), lambda j, i: (0, j)),
                pl.BlockSpec((1, tile_h), lambda j, i: (0, j)),
            ],
            out_specs=pl.BlockSpec((tile_n, tile_h), lambda j, i: (i, j)),
        ),
        compiler_params=pltpu.CompilerParams(
            dimension_semantics=("parallel", "parallel"),
            vmem_limit_bytes=vmem_limit,
        ),
    )(x2d, scale, shift)


# ----------------------------------------------------------------------------
# Tile planning.
# ----------------------------------------------------------------------------
def _vmem_budget_bytes():
    """Generation-gated scoped-VMEM ceiling (v7x has only 64 MiB/TC)."""
    try:
        phys = pltpu.get_tpu_info().vmem_capacity_bytes
    except Exception:
        phys = 64 << 20
    if phys <= (64 << 20):   # v7x-class
        return 32 << 20
    return 64 << 20          # v5e / v6e (128 MiB physical)


def _pick_tile_h_single(n_rows, hidden, itemsize, vmem_limit):
    """Tile width for the single-pass (H-grid only) path, or None if infeasible."""
    h128 = pl.cdiv(hidden, LANE) * LANE
    min_tile = 2 * LANE if itemsize <= 2 else LANE   # >= 512 B contiguous row segments
    min_tile = min(min_tile, h128)

    # Per lane-column VMEM cost: double-buffered input + output blocks plus the
    # in-kernel f32 temporaries (centered tile and its square).
    per_col = n_rows * (4 * itemsize + 8)
    vmem_cap = ((vmem_limit * 3 // 4) // per_col) // LANE * LANE
    if vmem_cap < min_tile:
        return None                                   # -> two-pass N-tiled path

    # Pipelining caps: ~2 MiB input per block and aim for >= 4 H tiles so the
    # fetch/compute/writeback streams overlap and both v7x TCs get tiles.
    pipe_cap = max(min_tile, ((2 << 20) // (n_rows * itemsize)) // LANE * LANE)
    tiles_cap = max(min_tile, (hidden // 4) // LANE * LANE)

    tile_h = min(h128, vmem_cap, pipe_cap, tiles_cap)
    if tile_h >= hidden:       # single tile anyway: use the exact (legal) full dim
        tile_h = hidden
    return tile_h


def _pick_tiles_two_pass(n_rows, hidden, itemsize, vmem_limit, max_tile_n=None):
    h128 = pl.cdiv(hidden, LANE) * LANE
    tile_h = min(h128, 4 * LANE)          # 512 lanes -> >= 1 KiB row segments
    if tile_h >= hidden:
        tile_h = hidden

    budget = vmem_limit * 3 // 4
    per_row = tile_h * (4 * itemsize + 8)  # dbl-buffered in/out blocks + f32 temps
    tile_n = ((2 << 20) // (tile_h * itemsize)) // 8 * 8     # ~2 MiB input block
    tile_n = min(tile_n, (budget // per_row) // 8 * 8)
    tile_n = max(8, tile_n)
    if max_tile_n is not None:
        tile_n = min(tile_n, max_tile_n)
    if tile_n >= n_rows:
        tile_n = n_rows
    return tile_h, tile_n


# ----------------------------------------------------------------------------
# Public wrapper (matches Seqbn.forward semantics).
# ----------------------------------------------------------------------------
def seqbn_forward(batch, gamma, beta, *, force_two_pass=False, max_tile_n=None):
    """batch: (seq, bsz, hidden); gamma/beta: (hidden,). Returns (seq, bsz, hidden)."""
    seqn, batchn, hidden = batch.shape
    n = seqn * batchn
    x2d = batch.reshape(n, hidden)
    gamma2d = gamma.reshape(1, hidden).astype(jnp.float32)
    beta2d = beta.reshape(1, hidden).astype(jnp.float32)

    itemsize = jnp.dtype(batch.dtype).itemsize
    vmem_limit = _vmem_budget_bytes()

    tile_h = None if force_two_pass else _pick_tile_h_single(n, hidden, itemsize, vmem_limit)
    if tile_h is None:
        th, tn = _pick_tiles_two_pass(n, hidden, itemsize, vmem_limit, max_tile_n)
        out2d = _seqbn_two_pass(x2d, gamma2d, beta2d, th, tn, vmem_limit)
    else:
        out2d = _seqbn_single_pass(x2d, gamma2d, beta2d, tile_h, vmem_limit)

    # TODO(synk): running_mean/running_var updates are training-time buffer side
    # effects of torch BatchNorm1d and are not part of the returned value; only
    # the forward output (batch-stat normalization) is computed here.
    return out2d.reshape(seqn, batchn, hidden)


def _reference(batch, gamma, beta):
    seqn, batchn, hidden = batch.shape
    x = batch.reshape(seqn * batchn, hidden).astype(jnp.float32)
    mean = jnp.mean(x, axis=0, keepdims=True)
    var = jnp.mean((x - mean) ** 2, axis=0, keepdims=True)
    y = (x - mean) / jnp.sqrt(var + EPS) * gamma.reshape(1, -1).astype(jnp.float32) \
        + beta.reshape(1, -1).astype(jnp.float32)
    return y.reshape(seqn, batchn, hidden).astype(batch.dtype)


if __name__ == "__main__":
    key = jax.random.PRNGKey(0)
    k1, k2, k3 = jax.random.split(key, 3)

    # BatchNorm1d default parameter init: weight=1, bias=0 (deterministic).
    seq, bsz, hidden = 8, 2, 32
    gamma = jnp.ones((hidden,), dtype=jnp.float32)
    beta = jnp.zeros((hidden,), dtype=jnp.float32)

    # 1) f32, single-pass path (canonical small shape).
    x = jax.random.normal(k1, (seq, bsz, hidden), dtype=jnp.float32)
    out = jax.block_until_ready(seqbn_forward(x, gamma, beta))
    ref = _reference(x, gamma, beta)
    assert out.shape == (seq, bsz, hidden)
    assert jnp.allclose(out, ref, atol=1e-4, rtol=1e-5)

    # 2) bf16 input, exercises the MXU row-sum path.
    hid2 = 128
    xb = jax.random.normal(k2, (seq, bsz, hid2), dtype=jnp.float32).astype(jnp.bfloat16)
    g2 = jnp.ones((hid2,), dtype=jnp.float32)
    b2 = jnp.zeros((hid2,), dtype=jnp.float32)
    outb = jax.block_until_ready(seqbn_forward(xb, g2, b2))
    refb = _reference(xb, g2, b2)
    assert jnp.allclose(outb.astype(jnp.float32), refb.astype(jnp.float32),
                        atol=5e-2, rtol=5e-2)

    # 3) Forced two-pass (N-tiled) fallback, with a partial (masked) last N tile.
    seq3, bsz3 = 5, 2                          # N = 10, tile_n = 8
    x3 = jax.random.normal(k3, (seq3, bsz3, hidden), dtype=jnp.float32)
    out3 = jax.block_until_ready(
        seqbn_forward(x3, gamma, beta, force_two_pass=True, max_tile_n=8))
    ref3 = _reference(x3, gamma, beta)
    assert jnp.allclose(out3, ref3, atol=1e-4, rtol=1e-5)

    print("KERNEL_OK")
</pallas_src>

<mosaic_0001>
module attributes {stable_mosaic.version = 11 : i64} {
  func.func @kernel(%arg0: i32, %arg1: memref<16x32xf32, #tpu.memory_space<vmem>>, %arg2: memref<1x32xf32, #tpu.memory_space<vmem>>, %arg3: memref<1x32xf32, #tpu.memory_space<vmem>>, %arg4: memref<16x32xf32, #tpu.memory_space<vmem>>) attributes {dimension_semantics = [#tpu.dimension_semantics<parallel>], iteration_bounds = array<i64: 1>, scalar_prefetch = 0 : i64, scratch_operands = 0 : i64, tpu.core_type = #tpu.core_type<tc>, window_params = [{transform_indices = @transform_0, window_bounds = array<i64: 16, 32>}, {transform_indices = @transform_1, window_bounds = array<i64: 1, 32>}, {transform_indices = @transform_2, window_bounds = array<i64: 1, 32>}, {transform_indices = @transform_3, window_bounds = array<i64: 16, 32>}]} {
    %c0 = arith.constant 0 : index
    %c0_0 = arith.constant 0 : index
    %0 = vector.load %arg1[%c0, %c0_0] : memref<16x32xf32, #tpu.memory_space<vmem>>, vector<16x32xf32>
    %cst = arith.constant dense<0.000000e+00> : vector<32xf32>
    %1 = vector.multi_reduction <add>, %0, %cst [0] : vector<16x32xf32> to vector<32xf32>
    %2 = vector.shape_cast %1 : vector<32xf32> to vector<1x32xf32>
    %cst_1 = arith.constant 6.250000e-02 : f32
    %3 = vector.broadcast %cst_1 : f32 to vector<1x32xf32>
    %4 = arith.mulf %2, %3 : vector<1x32xf32>
    %5 = vector.broadcast %4 : vector<1x32xf32> to vector<16x32xf32>
    %6 = arith.subf %0, %5 : vector<16x32xf32>
    %7 = arith.mulf %6, %6 : vector<16x32xf32>
    %cst_2 = arith.constant dense<0.000000e+00> : vector<32xf32>
    %8 = vector.multi_reduction <add>, %7, %cst_2 [0] : vector<16x32xf32> to vector<32xf32>
    %9 = vector.shape_cast %8 : vector<32xf32> to vector<1x32xf32>
    %cst_3 = arith.constant 6.250000e-02 : f32
    %10 = vector.broadcast %cst_3 : f32 to vector<1x32xf32>
    %11 = arith.mulf %9, %10 : vector<1x32xf32>
    %cst_4 = arith.constant 9.99999974E-6 : f32
    %12 = vector.broadcast %cst_4 : f32 to vector<1x32xf32>
    %13 = arith.addf %11, %12 : vector<1x32xf32>
    %14 = math.rsqrt %13 : vector<1x32xf32>
    %c0_5 = arith.constant 0 : index
    %c0_6 = arith.constant 0 : index
    %15 = vector.load %arg2[%c0_5, %c0_6] : memref<1x32xf32, #tpu.memory_space<vmem>>, vector<1x32xf32>
    %16 = arith.mulf %14, %15 : vector<1x32xf32>
    %c0_7 = arith.constant 0 : index
    %c0_8 = arith.constant 0 : index
    %17 = vector.load %arg3[%c0_7, %c0_8] : memref<1x32xf32, #tpu.memory_space<vmem>>, vector<1x32xf32>
    %18 = arith.mulf %4, %16 : vector<1x32xf32>
    %19 = arith.subf %17, %18 : vector<1x32xf32>
    %20 = vector.broadcast %16 : vector<1x32xf32> to vector<16x32xf32>
    %21 = arith.mulf %0, %20 : vector<16x32xf32>
    %22 = vector.broadcast %19 : vector<1x32xf32> to vector<16x32xf32>
    %23 = arith.addf %21, %22 : vector<16x32xf32>
    %c0_9 = arith.constant 0 : index
    %c0_10 = arith.constant 0 : index
    %24 = vector.load %arg4[%c0_9, %c0_10] : memref<16x32xf32, #tpu.memory_space<vmem>>, vector<16x32xf32>
    tpu.vector_store %arg4[%c0_9, %c0_10], %23 {strides = array<i32>} : memref<16x32xf32, #tpu.memory_space<vmem>>, vector<16x32xf32>,
    return
  }
  func.func @transform_0(%arg0: i32) -> (i32, i32) {
    %c0_i32 = arith.constant 0 : i32
    %c0_i32_0 = arith.constant 0 : i32
    return %c0_i32, %arg0 : i32, i32
  }
  func.func @transform_1(%arg0: i32) -> (i32, i32) {
    %c0_i32 = arith.constant 0 : i32
    %c0_i32_0 = arith.constant 0 : i32
    return %c0_i32, %arg0 : i32, i32
  }
  func.func @transform_2(%arg0: i32) -> (i32, i32) {
    %c0_i32 = arith.constant 0 : i32
    %c0_i32_0 = arith.constant 0 : i32
    return %c0_i32, %arg0 : i32, i32
  }
  func.func @transform_3(%arg0: i32) -> (i32, i32) {
    %c0_i32 = arith.constant 0 : i32
    %c0_i32_0 = arith.constant 0 : i32
    return %c0_i32, %arg0 : i32, i32
  }
}

</mosaic_0001>

<bundles_post_ra>
// kernel: tpu_custom_call.1
= control target key start
LH: loop header
LB: loop body
LE: loop exit
PB: predicated region body
PF: predicated region fallthrough
CT: control target
= control target key end

     0   :  { %8 = vsyncpa [#allocation3], 0  ;;  %s216_s0 = inlined_call_operand.hbm [shape: f32[16,32], index: 0, kind: input, shape index: {}]   ;;  %s217_s1 = inlined_call_operand.vmem [shape: f32[1,32], index: 1, kind: input, shape index: {}]   ;;  %s218_s2 = inlined_call_operand.vmem [shape: f32[1,32], index: 2, kind: input, shape index: {}]   ;;  %s219_s3 = inlined_call_operand.hbm [shape: f32[16,32], index: 3, kind: output, shape index: {}]  }
   0x1   :  { %9 = vsyncpa [#allocation4], 0  ;;  %s150_s12 = smov [#allocation2]   ;;  %s102_s16 = scalar_lea.hbm %s216_s0, 256 }
   0x2   :  { %s15_s13 = sshll.u32 %s150_s12, 4  ;;  %p103_p0 = scmp.ne.s32.totalorder %s216_s0, %s102_s16  ;;  %s16_s13 = int_to_ptr.vmem [resolvable:$true] %s15_s13 }
   0x3   :  { %p106_p1 = scmp.lt.u32.totalorder %s102_s16, %s216_s0 }
   0x5   :  { %p108_p2 = pnand %p106_p1, %p103_p0 }
   0x7   :  { %111 = shalt.err (!%p108_p2)
}
   0x8   :  { %s112_s21 = scalar_lea.vmem %s16_s13, 256  ;;  %p117_p4 = scmp.lt.s32.totalorder %s16_s13, %s16_s13 }
   0x9   :  { %p113_p3 = scmp.ne.s32.totalorder %s16_s13, %s112_s21  ;;  %p118_p5 = scmp.lt.s32.totalorder %s112_s21, %s112_s21 }
   0xb   :  { %p119_p6 = por %p118_p5, %p117_p4 }
   0xd   :  { %p120_p7 = pnand %p119_p6, %p113_p3 }
   0xf   :  { %123 = shalt.err (!%p120_p7)
}
  0x10   :  { %s151_s22 = smov 128   ;;  %s152_s23 = smov 8  }
  0x11   :  { %21 = dma.hbm_to_vmem [thread:$0]  %s216_s0, 256, %s16_s13, [#allocation3], %s151_s22, %s151_s22, %s152_s23  }
  0x12   :  { %146 = dma.done.wait [#allocation3], 256  }
  0x13   :  { %147 = vsyncadd [#allocation3], 4294967040  ;;  %vm31_vm0 = vcmask 261120   ;;  %v29_v0 = vld [vmem:[#allocation2] sm:$0xff]  ;;  %v30_v1 = vld [vmem:[#allocation2 + $0x8] sm:$0xff]  ;;  %v63_v27 = vlaneseq  ;;  %s153_s29 = smov [#allocation5]  }
  0x14   :  { %v32_v2 = vsel %vm31_vm0, %v29_v0, 0.0  ;;  %v33_v3 = vsel %vm31_vm0, %v30_v1, 0.0  ;;  %v58_v29 = vld [vmem:[%s217_s1] sm:$0x1]  ;;  %s84_s30 = sshll.u32 %s153_s29, 4  ;;  %s85_s30 = int_to_ptr.vmem [resolvable:$true] %s84_s30 }
  0x15   :  { %v34_v4 = vadd.f32 %v33_v3, %v32_v2  ;;  %v64_v28 = vshrl.u32 %v63_v27, 7  ;;  %v60_v33 = vld [vmem:[%s218_s2] sm:$0x1]  ;;  %s124_s1 = scalar_lea.vmem %s85_s30, 256  ;;  %p129_p9 = scmp.lt.s32.totalorder %s85_s30, %s85_s30 }
  0x16   :  { %p125_p8 = scmp.ne.s32.totalorder %s85_s30, %s124_s1  ;;  %p130_p10 = scmp.lt.s32.totalorder %s124_s1, %s124_s1 }
  0x17   :  { %v35_v5 = vrot.slane %v34_v4, 4  ;;  %v65_v30 = vsub.s32 0, %v64_v28 }
  0x18   :  { %p131_p11 = por %p130_p10, %p129_p9 }
  0x19   :  { %v36_v6 = vadd.f32 %v35_v5, %v34_v4 }
  0x1a   :  { %p132_p12 = pnand %p131_p11, %p125_p8 }
  0x1b   :  { %v37_v7 = vrot.slane %v36_v6, 2 }
  0x1d   :  { %v38_v8 = vadd.f32 %v37_v7, %v36_v6 }
  0x1f   :  { %v39_v9 = vrot.slane %v38_v8, 1 }
  0x21   :  { %v40_v10 = vadd.f32 %v39_v9, %v38_v8 }
  0x23   :  { %v41_v11 = vmul.f32 0.0625, %v40_v10 }
  0x25   :  { %v42_v12 = vsub.f32 %v29_v0, %v41_v11  ;;  %v43_v13 = vsub.f32 %v30_v1, %v41_v11 }
  0x27   :  { %v44_v14 = vmul.f32 %v42_v12, %v42_v12  ;;  %v45_v15 = vmul.f32 %v43_v13, %v43_v13 }
  0x29   :  { %v46_v16 = vsel %vm31_vm0, %v44_v14, 0.0  ;;  %v47_v17 = vsel %vm31_vm0, %v45_v15, 0.0 }
  0x2a   :  { %v48_v18 = vadd.f32 %v47_v17, %v46_v16 }
  0x2c   :  { %v49_v19 = vrot.slane %v48_v18, 4 }
  0x2e   :  { %v50_v20 = vadd.f32 %v49_v19, %v48_v18 }
  0x30   :  { %v51_v21 = vrot.slane %v50_v20, 2 }
  0x32   :  { %v52_v22 = vadd.f32 %v51_v21, %v50_v20 }
  0x34   :  { %v53_v23 = vrot.slane %v52_v22, 1 }
  0x36   :  { %v54_v24 = vadd.f32 %v53_v23, %v52_v22 }
  0x38   :  { %v55_v25 = vmul.f32 0.0625, %v54_v24 }
  0x3a   :  { %v56_v26 = vadd.f32 1e-05, %v55_v25 }
  0x3c   :  { %100 = vrsqrt.f32 %v56_v26 }
  0x46   :  { %v101_v31 = vpop.eup %100 }
  0x47   :  { %v59_v32 = vmul.f32 %v101_v31, %v58_v29 }
  0x49   :  { %v61_v34 = vmul.f32 %v59_v32, %v41_v11  ;;  %v66_v35 = vrot.slane %v59_v32, %v65_v30 }
  0x4b   :  { %v62_v36 = vsub.f32 %v60_v33, %v61_v34  ;;  %v67_v37 = vmul.f32 %v66_v35, %v29_v0  ;;  %v68_v38 = vmul.f32 %v66_v35, %v30_v1 }
  0x4d   :  { %v73_v39 = vrot.slane %v62_v36, %v65_v30 }
  0x4f   :  { %v75_v40 = vadd.f32 %v73_v39, %v67_v37  ;;  %v76_v41 = vadd.f32 %v73_v39, %v68_v38 }
  0x51   :  { %77 = vst.msk [vmem:[#allocation5] sm:$0xff] %vm31_vm0, %v75_v40  ;;  %78 = vst.msk [vmem:[#allocation5 + $0x8] sm:$0xff] %vm31_vm0, %v76_v41 }
  0x52   :  { %135 = shalt.err (!%p132_p12)
}
  0x53   :  { %s136_s5 = scalar_lea.hbm %s219_s3, 256 }
  0x54   :  { %p137_p13 = scmp.ne.s32.totalorder %s219_s3, %s136_s5  ;;  %p140_p0 = scmp.lt.u32.totalorder %s136_s5, %s219_s3 }
  0x56   :  { %p142_p1 = pnand %p140_p0, %p137_p13 }
  0x58   :  { %145 = shalt.err (!%p142_p1)
}
  0x59   :  { %90 = dma.vmem_to_hbm [thread:$0]  %s85_s30, 256, %s219_s3, [#allocation4], %s151_s22, %s151_s22, %s152_s23  }
  0x5a   :  { %148 = dma.done.wait [#allocation4], 256  }
  0x5b   :  { %149 = vsyncadd [#allocation4], 4294967040 }
  0x5c   :  { %94 = vsyncpa [#allocation3], 1 }
  0x5d   :  { %95 = vsyncpa [#allocation4], 1 }

</bundles_post_ra>
